<compile_context>
chip_gen: v5e
topology: v5e:2x2
jax: 0.10.0
libtpu: 0.0.40
codegen_flags: <defaults>
</compile_context>

<pallas_src>
import jax
import jax.numpy as jnp
from jax.experimental import pallas as pl
from jax.experimental.pallas import tpu as pltpu

_LANES = 128
_SUBLANES = 8


def _round_up(n, m):
    return ((n + m - 1) // m) * m


def _cdiv(a, b):
    return (a + b - 1) // b


# --------------------------------------------------------------------------- kernels
def _adv_resident_kernel(x_ref, w1_ref, b1_ref, w2_ref, b2_ref, w3_ref, b3_ref, o_ref):
    # layer 1: in-kernel f32->bf16 cast (VPU, hidden under MXU), f32 accumulation.
    x = x_ref[...].astype(jnp.bfloat16)
    h1 = jnp.dot(x, w1_ref[...], preferred_element_type=jnp.float32)
    h1 = jnp.maximum(h1 + b1_ref[...], 0.0)                 # dropout1: eval identity
    # layer 2
    h2 = jnp.dot(h1.astype(jnp.bfloat16), w2_ref[...],
                 preferred_element_type=jnp.float32)
    h2 = jnp.maximum(h2 + b2_ref[...], 0.0)                 # dropout2: eval identity
    # layer 3: out_features == 1 -> VPU multiply + XLU lane reduction (skip MXU)
    y = jnp.sum(h2 * w3_ref[...], axis=-1, keepdims=True) + b3_ref[...]
    # exact sigmoid (EUP exp; only TB values, exact divide is essentially free)
    y = 1.0 / (1.0 + jnp.exp(-y))
    # lane-dense store (bf16 halves writeback bytes); wrapper slices column 0.
    o_ref[...] = jnp.broadcast_to(y, o_ref.shape).astype(o_ref.dtype)


def _adv_ksplit_kernel(x_ref, w1_ref, b1_ref, w2_ref, b2_ref, w3_ref, b3_ref,
                       o_ref, acc_ref):
    # grid = (batch_tiles, k_tiles); K axis last and "arbitrary".
    k = pl.program_id(1)

    @pl.when(k == 0)
    def _():
        acc_ref[...] = jnp.zeros_like(acc_ref)

    acc_ref[...] += jnp.dot(x_ref[...].astype(jnp.bfloat16), w1_ref[...],
                            preferred_element_type=jnp.float32)

    @pl.when(k == pl.num_programs(1) - 1)
    def _():
        h1 = jnp.maximum(acc_ref[...] + b1_ref[...], 0.0)
        h2 = jnp.dot(h1.astype(jnp.bfloat16), w2_ref[...],
                     preferred_element_type=jnp.float32)
        h2 = jnp.maximum(h2 + b2_ref[...], 0.0)
        y = jnp.sum(h2 * w3_ref[...], axis=-1, keepdims=True) + b3_ref[...]
        y = 1.0 / (1.0 + jnp.exp(-y))
        o_ref[...] = jnp.broadcast_to(y, o_ref.shape).astype(o_ref.dtype)


# ----------------------------------------------------------------- VMEM budgeting
def _vmem_resident_bytes(tb, fp, hp):
    x_tile = tb * fp * 4 * 2                    # f32 x tile, double-buffered
    o_tile = tb * _LANES * 2 * 2                # bf16 out tile, double-buffered
    w_big = (fp * hp + hp * hp) * 2             # bf16 w1 + w2, single-buffered
    small = 3 * hp * 4 + 4                      # b1, b2, w3 rows + b3, single-buffered
    live = 2 * tb * hp * 4                      # h1 / h2 f32 live values
    return x_tile + o_tile + w_big + small + live


def _vmem_ksplit_bytes(tb, tk, hp):
    x_tile = tb * tk * 4 * 2                    # f32 x K-slab, double-buffered
    w1_tile = tk * hp * 2 * 2                   # bf16 w1 K-slab, double-buffered
    o_tile = tb * _LANES * 2 * 2
    w2 = hp * hp * 2                            # single-buffered
    small = 3 * hp * 4 + 4
    acc = tb * hp * 4                           # f32 accumulator scratch
    live = 2 * tb * hp * 4
    return x_tile + w1_tile + o_tile + w2 + small + acc + live


def _vmem_capacity_bytes():
    try:
        return int(pltpu.get_tpu_info().vmem_capacity_bytes)
    except Exception:
        return 128 << 20                        # v5e / v6e default


def _choose_config(B, Fp, Hp):
    cap = _vmem_capacity_bytes()
    small_vmem = cap <= (64 << 20)              # v7x: 64 MiB / TensorCore
    budget = min(cap - (8 << 20), 112 << 20)    # leave compiler headroom; never full VMEM
    base_tb = 256 if small_vmem else 512        # v7x: 256, v5e/v6e: 512
    tb = min(base_tb, _round_up(B, _SUBLANES))
    # v7x: make sure the "parallel" batch axis yields >= 2 tiles for the 2 TCs.
    if small_vmem and B > _SUBLANES and _round_up(B, tb) // tb < 2:
        tb = _round_up(_cdiv(B, 2), _SUBLANES)
    while tb > _SUBLANES and _vmem_resident_bytes(tb, Fp, Hp) > budget:
        tb = max(_SUBLANES, tb // 2)
    if _vmem_resident_bytes(tb, Fp, Hp) <= budget:
        return dict(mode="resident", tb=tb, tk=None,
                    vmem=_vmem_resident_bytes(tb, Fp, Hp), budget=budget)
    # W1 cannot stay VMEM-resident -> K-split over the in_feature axis.
    for tk in (2048, 1024, 512, 256, _LANES):
        if Fp % tk:
            continue
        t = tb
        while True:
            if _vmem_ksplit_bytes(t, tk, Hp) <= budget:
                return dict(mode="ksplit", tb=t, tk=tk,
                            vmem=_vmem_ksplit_bytes(t, tk, Hp), budget=budget)
            if t <= _SUBLANES:
                break
            t = max(_SUBLANES, t // 2)
    raise ValueError(
        f"AdversarialNetwork kernel: no tiling fits VMEM budget {budget} bytes "
        f"(in_feature_padded={Fp}, hidden_padded={Hp}).")


# ----------------------------------------------------------------------- wrapper
def prepare_params(params):
    """One-time pad + bf16 cast of the weights (hoisted out of the per-call path)."""
    F, H = params["w1"].shape
    Fp, Hp = _round_up(F, _LANES), _round_up(H, _LANES)
    w1 = jnp.zeros((Fp, Hp), jnp.bfloat16).at[:F, :H].set(
        params["w1"].astype(jnp.bfloat16))
    w2 = jnp.zeros((Hp, Hp), jnp.bfloat16).at[:H, :H].set(
        params["w2"].astype(jnp.bfloat16))
    b1 = jnp.zeros((1, Hp), jnp.float32).at[:, :H].set(
        params["b1"].reshape(1, H).astype(jnp.float32))
    b2 = jnp.zeros((1, Hp), jnp.float32).at[:, :H].set(
        params["b2"].reshape(1, H).astype(jnp.float32))
    w3 = jnp.zeros((1, Hp), jnp.float32).at[:, :H].set(
        params["w3"].reshape(1, H).astype(jnp.float32))
    b3 = params["b3"].reshape(1, 1).astype(jnp.float32)
    return {"w1": w1, "b1": b1, "w2": w2, "b2": b2, "w3": w3, "b3": b3}


@jax.jit
def adversarial_network_forward(x, prepared):
    """x: (B, in_feature) float32. prepared: output of prepare_params()."""
    B, F = x.shape
    Fp, Hp = prepared["w1"].shape
    cfg = _choose_config(B, Fp, Hp)
    tb, tk = cfg["tb"], cfg["tk"]
    Bp = _round_up(B, tb)
    num_tiles = Bp // tb

    # Only materialize a padded x when actually required (F % 128 != 0 or ragged B).
    xp = x
    if (B != Bp) or (F != Fp):
        xp = jnp.zeros((Bp, Fp), x.dtype).at[:B, :F].set(x)

    # Accurate footprint + headroom; never the full physical VMEM (v7x = 64 MiB/TC).
    vmem_limit = int(min(cfg["budget"], max(cfg["vmem"] + (4 << 20), 32 << 20)))

    def _const(shape, n_grid):
        nd = len(shape)
        if n_grid == 1:
            index_map = lambda i: (0,) * nd
        else:
            index_map = lambda i, k: (0,) * nd
        # Constant block index across the grid -> single buffer (halves VMEM use).
        return pl.BlockSpec(shape, index_map, pipeline_mode=pl.Buffered(1))

    weights = (prepared["w1"], prepared["b1"], prepared["w2"], prepared["b2"],
               prepared["w3"], prepared["b3"])

    if cfg["mode"] == "resident":
        out = pl.pallas_call(
            _adv_resident_kernel,
            out_shape=jax.ShapeDtypeStruct((Bp, _LANES), jnp.bfloat16),
            grid=(num_tiles,),
            in_specs=[
                pl.BlockSpec((tb, Fp), lambda i: (i, 0)),        # x: tiled over batch
                _const(prepared["w1"].shape, 1),
                _const(prepared["b1"].shape, 1),
                _const(prepared["w2"].shape, 1),
                _const(prepared["b2"].shape, 1),
                _const(prepared["w3"].shape, 1),
                _const(prepared["b3"].shape, 1),
            ],
            out_specs=pl.BlockSpec((tb, _LANES), lambda i: (i, 0)),
            compiler_params=pltpu.CompilerParams(
                dimension_semantics=("parallel",),
                vmem_limit_bytes=vmem_limit),
        )(xp, *weights)
    else:
        num_k = Fp // tk
        out = pl.pallas_call(
            _adv_ksplit_kernel,
            out_shape=jax.ShapeDtypeStruct((Bp, _LANES), jnp.bfloat16),
            grid=(num_tiles, num_k),
            in_specs=[
                pl.BlockSpec((tb, tk), lambda i, k: (i, k)),     # x K-slab
                pl.BlockSpec((tk, Hp), lambda i, k: (k, 0)),     # w1 K-slab
                _const(prepared["b1"].shape, 2),
                _const(prepared["w2"].shape, 2),
                _const(prepared["b2"].shape, 2),
                _const(prepared["w3"].shape, 2),
                _const(prepared["b3"].shape, 2),
            ],
            out_specs=pl.BlockSpec((tb, _LANES), lambda i, k: (i, 0)),
            scratch_shapes=[pltpu.VMEM((tb, Hp), jnp.float32)],
            compiler_params=pltpu.CompilerParams(
                dimension_semantics=("parallel", "arbitrary"),
                vmem_limit_bytes=vmem_limit),
        )(xp, *weights)

    return out[:B, :1].astype(jnp.float32)


def init_params(key, in_feature, hidden_size):
    """Synthetic init mirroring init_weights(): xavier_normal weights, zero bias."""
    k1, k2, k3 = jax.random.split(key, 3)

    def xavier_normal(k, fan_in, fan_out):
        std = jnp.sqrt(2.0 / (fan_in + fan_out))
        return (std * jax.random.normal(k, (fan_in, fan_out))).astype(jnp.float32)

    return {
        "w1": xavier_normal(k1, in_feature, hidden_size),
        "b1": jnp.zeros((1, hidden_size), jnp.float32),
        "w2": xavier_normal(k2, hidden_size, hidden_size),
        "b2": jnp.zeros((1, hidden_size), jnp.float32),
        "w3": xavier_normal(k3, hidden_size, 1),
        "b3": jnp.zeros((1, 1), jnp.float32),
    }


if __name__ == "__main__":
    key = jax.random.PRNGKey(0)
    k_x, k_p = jax.random.split(key)

    batch, in_feature, hidden_size = 8, 32, 32
    x = jax.random.normal(k_x, (batch, in_feature), dtype=jnp.float32)
    params = init_params(k_p, in_feature, hidden_size)
    prepared = prepare_params(params)          # one-time pad + bf16 cast (hoisted)

    y = adversarial_network_forward(x, prepared)
    y = jax.block_until_ready(y)

    # f32 reference (kernel uses bf16 MXU operands + bf16 output tile -> loosened tol)
    h1 = jnp.maximum(x @ params["w1"] + params["b1"], 0.0)
    h2 = jnp.maximum(h1 @ params["w2"] + params["b2"], 0.0)
    y_ref = jax.nn.sigmoid(h2 @ params["w3"] + params["b3"])
    assert y.shape == (batch, 1)
    assert jnp.allclose(y, y_ref, atol=2e-2, rtol=2e-2), "mismatch vs reference"

    print("KERNEL_OK")
</pallas_src>

<mosaic_0001>
module attributes {stable_mosaic.version = 11 : i64} {
  func.func @_adv_resident_kernel(%arg0: i32, %arg1: memref<8x128xf32, #tpu.memory_space<vmem>>, %arg2: memref<128x128xbf16, #tpu.memory_space<vmem>>, %arg3: memref<1x128xf32, #tpu.memory_space<vmem>>, %arg4: memref<128x128xbf16, #tpu.memory_space<vmem>>, %arg5: memref<1x128xf32, #tpu.memory_space<vmem>>, %arg6: memref<1x128xf32, #tpu.memory_space<vmem>>, %arg7: memref<1x1xf32, #tpu.memory_space<vmem>>, %arg8: memref<8x128xbf16, #tpu.memory_space<vmem>>) attributes {dimension_semantics = [#tpu.dimension_semantics<parallel>], iteration_bounds = array<i64: 1>, scalar_prefetch = 0 : i64, scratch_operands = 0 : i64, tpu.core_type = #tpu.core_type<tc>, window_params = [{transform_indices = @transform_0, window_bounds = array<i64: 8, 128>}, {pipeline_mode = #tpu.pipeline_mode<synchronous>, transform_indices = @transform_1, window_bounds = array<i64: 128, 128>}, {pipeline_mode = #tpu.pipeline_mode<synchronous>, transform_indices = @transform_2, window_bounds = array<i64: 1, 128>}, {pipeline_mode = #tpu.pipeline_mode<synchronous>, transform_indices = @transform_3, window_bounds = array<i64: 128, 128>}, {pipeline_mode = #tpu.pipeline_mode<synchronous>, transform_indices = @transform_4, window_bounds = array<i64: 1, 128>}, {pipeline_mode = #tpu.pipeline_mode<synchronous>, transform_indices = @transform_5, window_bounds = array<i64: 1, 128>}, {pipeline_mode = #tpu.pipeline_mode<synchronous>, transform_indices = @transform_6, window_bounds = array<i64: 1, 1>}, {transform_indices = @transform_7, window_bounds = array<i64: 8, 128>}]} {
    %c0 = arith.constant 0 : index
    %c0_0 = arith.constant 0 : index
    %0 = vector.load %arg1[%c0, %c0_0] : memref<8x128xf32, #tpu.memory_space<vmem>>, vector<8x128xf32>
    %1 = arith.truncf %0 : vector<8x128xf32> to vector<8x128xbf16>
    %c0_1 = arith.constant 0 : index
    %c0_2 = arith.constant 0 : index
    %2 = vector.load %arg2[%c0_1, %c0_2] : memref<128x128xbf16, #tpu.memory_space<vmem>>, vector<128x128xbf16>
    %cst = arith.constant dense<0.000000e+00> : vector<8x128xf32>
    %3 = tpu.matmul %1, %2, %cst {dimension_numbers = #tpu.dot_dimension_numbers<[1], [0], [0], [1], [0, 0, 1, 1], [], []>} : vector<8x128xbf16>, vector<128x128xbf16>, vector<8x128xf32> -> vector<8x128xf32>
    %c0_3 = arith.constant 0 : index
    %c0_4 = arith.constant 0 : index
    %4 = vector.load %arg3[%c0_3, %c0_4] : memref<1x128xf32, #tpu.memory_space<vmem>>, vector<1x128xf32>
    %5 = vector.broadcast %4 : vector<1x128xf32> to vector<8x128xf32>
    %6 = arith.addf %3, %5 : vector<8x128xf32>
    %cst_5 = arith.constant 0.000000e+00 : f32
    %7 = vector.broadcast %cst_5 : f32 to vector<8x128xf32>
    %8 = arith.maximumf %6, %7 : vector<8x128xf32>
    %9 = arith.truncf %8 : vector<8x128xf32> to vector<8x128xbf16>
    %c0_6 = arith.constant 0 : index
    %c0_7 = arith.constant 0 : index
    %10 = vector.load %arg4[%c0_6, %c0_7] : memref<128x128xbf16, #tpu.memory_space<vmem>>, vector<128x128xbf16>
    %cst_8 = arith.constant dense<0.000000e+00> : vector<8x128xf32>
    %11 = tpu.matmul %9, %10, %cst_8 {dimension_numbers = #tpu.dot_dimension_numbers<[1], [0], [0], [1], [0, 0, 1, 1], [], []>} : vector<8x128xbf16>, vector<128x128xbf16>, vector<8x128xf32> -> vector<8x128xf32>
    %c0_9 = arith.constant 0 : index
    %c0_10 = arith.constant 0 : index
    %12 = vector.load %arg5[%c0_9, %c0_10] : memref<1x128xf32, #tpu.memory_space<vmem>>, vector<1x128xf32>
    %13 = vector.broadcast %12 : vector<1x128xf32> to vector<8x128xf32>
    %14 = arith.addf %11, %13 : vector<8x128xf32>
    %cst_11 = arith.constant 0.000000e+00 : f32
    %15 = vector.broadcast %cst_11 : f32 to vector<8x128xf32>
    %16 = arith.maximumf %14, %15 : vector<8x128xf32>
    %c0_12 = arith.constant 0 : index
    %c0_13 = arith.constant 0 : index
    %17 = vector.load %arg6[%c0_12, %c0_13] : memref<1x128xf32, #tpu.memory_space<vmem>>, vector<1x128xf32>
    %18 = vector.broadcast %17 : vector<1x128xf32> to vector<8x128xf32>
    %19 = arith.mulf %16, %18 : vector<8x128xf32>
    %cst_14 = arith.constant dense<0.000000e+00> : vector<8xf32>
    %20 = vector.multi_reduction <add>, %19, %cst_14 [1] : vector<8x128xf32> to vector<8xf32>
    %21 = vector.shape_cast %20 : vector<8xf32> to vector<8x1xf32>
    %c0_15 = arith.constant 0 : index
    %c0_16 = arith.constant 0 : index
    %22 = vector.load %arg7[%c0_15, %c0_16] : memref<1x1xf32, #tpu.memory_space<vmem>>, vector<1x1xf32>
    %23 = vector.broadcast %22 : vector<1x1xf32> to vector<8x1xf32>
    %24 = arith.addf %21, %23 : vector<8x1xf32>
    %cst_17 = arith.constant 0.000000e+00 : f32
    %25 = vector.broadcast %cst_17 : f32 to vector<8x1xf32>
    %26 = arith.subf %25, %24 : vector<8x1xf32>
    %27 = math.exp %26 : vector<8x1xf32>
    %cst_18 = arith.constant 1.000000e+00 : f32
    %28 = vector.broadcast %cst_18 : f32 to vector<8x1xf32>
    %29 = arith.addf %28, %27 : vector<8x1xf32>
    %cst_19 = arith.constant 1.000000e+00 : f32
    %30 = vector.broadcast %cst_19 : f32 to vector<8x1xf32>
    %31 = arith.divf %30, %29 : vector<8x1xf32>
    %32 = vector.shape_cast %31 : vector<8x1xf32> to vector<8x1xf32>
    %33 = vector.broadcast %32 : vector<8x1xf32> to vector<8x128xf32>
    %34 = arith.truncf %33 : vector<8x128xf32> to vector<8x128xbf16>
    %c0_20 = arith.constant 0 : index
    %c0_21 = arith.constant 0 : index
    %35 = vector.load %arg8[%c0_20, %c0_21] : memref<8x128xbf16, #tpu.memory_space<vmem>>, vector<8x128xbf16>
    tpu.vector_store %arg8[%c0_20, %c0_21], %34 {strides = array<i32>} : memref<8x128xbf16, #tpu.memory_space<vmem>>, vector<8x128xbf16>,
    return
  }
  func.func @transform_0(%arg0: i32) -> (i32, i32) {
    %c0_i32 = arith.constant 0 : i32
    %c0_i32_0 = arith.constant 0 : i32
    return %arg0, %c0_i32 : i32, i32
  }
  func.func @transform_1(%arg0: i32) -> (i32, i32) {
    %c0_i32 = arith.constant 0 : i32
    %c0_i32_0 = arith.constant 0 : i32
    %c0_i32_1 = arith.constant 0 : i32
    return %c0_i32, %c0_i32_0 : i32, i32
  }
  func.func @transform_2(%arg0: i32) -> (i32, i32) {
    %c0_i32 = arith.constant 0 : i32
    %c0_i32_0 = arith.constant 0 : i32
    %c0_i32_1 = arith.constant 0 : i32
    return %c0_i32, %c0_i32_0 : i32, i32
  }
  func.func @transform_3(%arg0: i32) -> (i32, i32) {
    %c0_i32 = arith.constant 0 : i32
    %c0_i32_0 = arith.constant 0 : i32
    %c0_i32_1 = arith.constant 0 : i32
    return %c0_i32, %c0_i32_0 : i32, i32
  }
  func.func @transform_4(%arg0: i32) -> (i32, i32) {
    %c0_i32 = arith.constant 0 : i32
    %c0_i32_0 = arith.constant 0 : i32
    %c0_i32_1 = arith.constant 0 : i32
    return %c0_i32, %c0_i32_0 : i32, i32
  }
  func.func @transform_5(%arg0: i32) -> (i32, i32) {
    %c0_i32 = arith.constant 0 : i32
    %c0_i32_0 = arith.constant 0 : i32
    %c0_i32_1 = arith.constant 0 : i32
    return %c0_i32, %c0_i32_0 : i32, i32
  }
  func.func @transform_6(%arg0: i32) -> (i32, i32) {
    %c0_i32 = arith.constant 0 : i32
    %c0_i32_0 = arith.constant 0 : i32
    %c0_i32_1 = arith.constant 0 : i32
    return %c0_i32, %c0_i32_0 : i32, i32
  }
  func.func @transform_7(%arg0: i32) -> (i32, i32) {
    %c0_i32 = arith.constant 0 : i32
    %c0_i32_0 = arith.constant 0 : i32
    return %arg0, %c0_i32 : i32, i32
  }
}

</mosaic_0001>

<bundles_post_ra>
// kernel: adversarial_network_forward.1
= control target key start
LH: loop header
LB: loop body
LE: loop exit
PB: predicated region body
PF: predicated region fallthrough
CT: control target
= control target key end

     0   :  { %s486_s0 = inlined_call_operand.vmem [shape: f32[8,128], index: 0, kind: input, shape index: {}]   ;;  %s487_s1 = inlined_call_operand.hbm [shape: bf16[128,128], index: 1, kind: input, shape index: {}]   ;;  %s488_s2 = inlined_call_operand.vmem [shape: f32[1,128], index: 2, kind: input, shape index: {}]   ;;  %s489_s3 = inlined_call_operand.hbm [shape: bf16[128,128], index: 3, kind: input, shape index: {}]   ;;  %s490_s4 = inlined_call_operand.vmem [shape: f32[1,128], index: 4, kind: input, shape index: {}]   ;;  %s491_s5 = inlined_call_operand.vmem [shape: f32[1,128], index: 5, kind: input, shape index: {}]   ;;  %s492_s6 = inlined_call_operand.<no memory space> [shape: f32[1,1], index: 6, kind: input, shape index: {}]   ;;  %s493_s7 = inlined_call_operand.vmem [shape: bf16[8,128], index: 7, kind: output, shape index: {}]  }
   0x1   :  { %v12_v0 = vstv %s492_s6 }
   0x2   :  { %13 = vst [vmem:[#allocation2] sm:$0x1] %v12_v0 }
   0x3   :  { %14 = vsyncpa [#allocation4], 0  ;;  %s22_s28 = sshll.u32 %s487_s1, 4  ;;  %s23_s28 = int_to_ptr.hbm [resolvable:$true] %s22_s28 }
   0x4   :  { %15 = vsyncpa [#allocation6], 0  ;;  %s417_s29 = smov [#allocation3]   ;;  %s37_s10 = sshll.u32 %s489_s3, 4  ;;  %s38_s10 = int_to_ptr.hbm [resolvable:$true] %s37_s10 }
   0x5   :  { %s24_s30 = sshll.u32 %s417_s29, 4  ;;  %s418_s11 = smov 64   ;;  %s25_s30 = int_to_ptr.vmem [resolvable:$true] %s24_s30 }
   0x6   :  { %s419_s12 = smov 4   ;;  %s420_s6 = smov [#allocation5]  }
   0x7   :  { %30 = dma.hbm_to_vmem [thread:$0]  %s23_s28, 1024, %s25_s30, [#allocation4], %s418_s11, %s418_s11, %s419_s12  }
   0x8   :  { %s39_s13 = sshll.u32 %s420_s6, 4  ;;  %s40_s13 = int_to_ptr.vmem [resolvable:$true] %s39_s13 }
   0x9   :  { %45 = dma.hbm_to_vmem [thread:$0]  %s38_s10, 1024, %s40_s13, [#allocation6], %s418_s11, %s418_s11, %s419_s12  }
   0xa   :  { %413 = dma.done.wait [#allocation4], 1024  }
   0xb   :  { %414 = vsyncadd [#allocation4], 4294966272 }
   0xc   :  { %415 = dma.done.wait [#allocation6], 1024  }
   0xd   :  { %416 = vsyncadd [#allocation6], 4294966272  ;;  %v342_v1 = vld [vmem:[#allocation3 + $0x38] sm:$0xff]  ;;  %v341_v2 = vld [vmem:[#allocation3 + $0x30] sm:$0xff]  ;;  %v421_v32 = vmov 0  }
   0xe   :  { %130 = vmatpush.bf16.msra.mxu0 %v342_v1  ;;  %v350_v3 = vld [vmem:[#allocation5 + $0x38] sm:$0xff]  ;;  %v349_v4 = vld [vmem:[#allocation5 + $0x30] sm:$0xff]  ;;  %v340_v5 = vld [vmem:[#allocation3 + $0x28] sm:$0xff]  ;;  %356 = vset.pattern.permute.xlu0 %v421_v32 }
   0xf   :  { %213 = vmatpush.bf16.msra.mxu1 %v350_v3  ;;  %v348_v6 = vld [vmem:[#allocation5 + $0x28] sm:$0xff]  ;;  %v339_v7 = vld [vmem:[#allocation3 + $0x20] sm:$0xff]  ;;  %v338_v9 = vld [vmem:[#allocation3 + $0x18] sm:$0xff] }
  0x10   :  { %v347_v8 = vld [vmem:[#allocation5 + $0x20] sm:$0xff]  ;;  %v346_v10 = vld [vmem:[#allocation5 + $0x18] sm:$0xff]  ;;  %v337_v11 = vld [vmem:[#allocation3 + $0x10] sm:$0xff] }
  0x11   :  { %v345_v12 = vld [vmem:[#allocation5 + $0x10] sm:$0xff]  ;;  %v336_v13 = vld [vmem:[#allocation3 + $0x8] sm:$0xff]  ;;  %v335_v14 = vld [vmem:[#allocation3] sm:$0xff] }
  0x12   :  { %131 = vmatpush.bf16.msra.mxu0 %v341_v2  ;;  %v60_v15 = vld [vmem:[%s486_s0] sm:$0xff]  ;;  %v344_v17 = vld [vmem:[#allocation5 + $0x8] sm:$0xff] }
  0x13   :  { %214 = vmatpush.bf16.msra.mxu1 %v349_v4  ;;  %v61_v16 = vpack.c.bf16 %v60_v15, %v60_v15  ;;  %v343_v18 = vld [vmem:[#allocation5] sm:$0xff]  ;;  %v357_v19 = vld [vmem:[%s488_s2] ss:$0 sm:$0xff] }
  0x14   :  { %v358_v25 = vld [vmem:[%s490_s4] ss:$0 sm:$0xff] }
  0x15   :  { %v359_v28 = vld [vmem:[%s491_s5] ss:$0 sm:$0xff] }
  0x16   :  { %132 = vmatpush.bf16.msra.mxu0 %v340_v5  ;;  %v360_v33 = vld [vmem:[#allocation2] ss:$0 sm:$0xff] }
  0x17   :  { %215 = vmatpush.bf16.msra.mxu1 %v348_v6 }
  0x1a   :  { %133 = vmatpush.bf16.msra.mxu0 %v339_v7 }
  0x1b   :  { %216 = vmatpush.bf16.msra.mxu1 %v347_v8 }
  0x1e   :  { %134 = vmatpush.bf16.msra.mxu0 %v338_v9 }
  0x1f   :  { %217 = vmatpush.bf16.msra.mxu1 %v346_v10 }
  0x22   :  { %135 = vmatpush.bf16.msra.mxu0 %v337_v11 }
  0x23   :  { %218 = vmatpush.bf16.msra.mxu1 %v345_v12 }
  0x26   :  { %136 = vmatpush.bf16.msra.mxu0 %v336_v13 }
  0x27   :  { %219 = vmatpush.bf16.msra.mxu1 %v344_v17 }
  0x2a   :  { %137 = vmatpush.bf16.msra.mxu0 %v335_v14 }
  0x2b   :  { %220 = vmatpush.bf16.msra.mxu1 %v343_v18 }
  0x2d   :  { %138 = vmatmul.bf16.vlgmr.msra.gmra.mxu0 %v61_v16 }
  0xaa   :  { %v139_v20 = vpop.f32.mrf.mxu0 }
  0xab   :  { %v140_v21 = vadd.f32 %v357_v19, %v139_v20 }
  0xad   :  { %v143_v22 = vmax.f32 %v140_v21, 0.0 }
  0xaf   :  { %v144_v23 = vpack.c.bf16 %v143_v22, %v143_v22 }
  0xb1   :  { %221 = vmatmul.bf16.vlgmr.msra.gmra.mxu1 %v144_v23 }
  0xb2   :  { %v141_v24 = vpop.f32.mrf.mxu0 }
 0x12e   :  { %v222_v26 = vpop.f32.mrf.mxu1 }
 0x12f   :  { %v223_v27 = vadd.f32 %v358_v25, %v222_v26 }
 0x131   :  { %v226_v29 = vmax.f32 %v223_v27, 0.0 }
 0x133   :  { %v231_v30 = vmul.f32 %v359_v28, %v226_v29 }
 0x135   :  { %232 = vadd.xlane.f32.xlu0 %v231_v30 }
 0x136   :  { %v224_v31 = vpop.f32.mrf.mxu1 }
 0x1a8   :  { %v233_v34 = vpop.xlane.xlu0 %232 }
 0x1a9   :  { %v238_v35 = vadd.f32 %v360_v33, %v233_v34 }
 0x1ab   :  { %v239_v36 = vsub.f32 0.0, %v238_v35 }
 0x1ad   :  { %v240_v37 = vmul.f32 1.442695, %v239_v36 }
 0x1af   :  { %361 = vpow2.f32 %v240_v37 }
 0x1b5   :  { %v362_v38 = vpop.eup %361 }
 0x1b6   :  { %v242_v39 = vadd.f32 1.0, %v362_v38 }
 0x1b8   :  { %363 = vrcp.f32 %v242_v39  ;;  %v254_v43 = vand.u32 2147483648, %v242_v39  ;;  %v252_v45 = vand.u32 2147483647, %v242_v39  ;;  %vm248_vm1 = vweird.f32 %v242_v39 }
 0x1ba   :  { %v255_v47 = vor.u32 1.1754944e-38, %v254_v43  ;;  %vm253_vm3 = vcmp.eq.f32.partialorder %v252_v45, 8.507059e+37 }
 0x1be   :  { %v364_v40 = vpop.eup %363 }
 0x1bf   :  { %v244_v41 = vmul.f32 %v364_v40, %v242_v39  ;;  %vm249_vm0 = vweird.f32 %v364_v40 }
 0x1c0   :  { %vm250_vm2 = vmor %vm248_vm1, %vm249_vm0 }
 0x1c1   :  { %v245_v42 = vsub.f32 1.0, %v244_v41 }
 0x1c3   :  { %v246_v44 = vmul.f32 %v364_v40, %v245_v42 }
 0x1c5   :  { %v247_v46 = vadd.f32 %v364_v40, %v246_v44 }
 0x1c7   :  { %v251_v48 = vsel %vm250_vm2, %v364_v40, %v247_v46 }
 0x1c8   :  { %v256_v49 = vsel %vm253_vm3, %v255_v47, %v251_v48 }
 0x1c9   :  { %260 = vperm.xlu0 %356, %v256_v49  }
 0x23b   :  { %v261_v50 = vpop.permute.xlu0 %260 }
 0x23c   :  { %v263_v51 = vpack.c.bf16 %v261_v50, %v261_v50 }
 0x23e   :  { %264 = vst [vmem:[%s493_s7] sm:$0xf] %v263_v51 }
 0x23f   :  { %269 = vsyncpa [#allocation4], 1 }
 0x240   :  { %270 = vsyncpa [#allocation6], 1 }

</bundles_post_ra>
